<compile_context>
chip_gen: v7x
topology: tpu7x:2x2x1
jax: 0.10.0
libtpu: 0.0.40
codegen_flags: <defaults>
</compile_context>

<pallas_src>
import functools

import jax
import jax.numpy as jnp
from jax.experimental import pallas as pl
from jax.experimental.pallas import tpu as pltpu

LANES = 128
SUBLANES = 8
TM_MAX = 4096  # rows per tile -> 2 MiB per f32 input block (safe on all gens)


def _bce_sum_kernel(p_ref, t_ref, o_ref, *, tm):
    """Accumulate the per-element BCE loss sum into an (8, 128) output block.

    Grid = (n_outer, n_inner). The output block index depends only on the
    outer ("parallel") axis, so the block stays resident in VMEM across the
    inner ("arbitrary") reduction axis and we accumulate directly into it.
    """
    i = pl.program_id(1)

    p = p_ref[...].astype(jnp.float32)
    t = t_ref[...].astype(jnp.float32)

    # PyTorch BCELoss clamps the log terms at -100 (avoids inf and 0*inf).
    log_p = jnp.maximum(jnp.log(p), -100.0)
    log_1mp = jnp.maximum(jnp.log(1.0 - p), -100.0)
    loss = -(t * log_p + (1.0 - t) * log_1mp)

    # (tm, 128) -> (8, 128): full-vreg VPU adds only, no cross-lane work.
    partial = jnp.sum(loss.reshape(tm // SUBLANES, SUBLANES, LANES), axis=0)

    @pl.when(i == 0)
    def _():
        o_ref[...] = jnp.zeros_like(o_ref)

    o_ref[...] += partial


def _bce_partial_sums(p_main, t_main, tm, n_outer, n_inner):
    """Run the Pallas kernel over the tile-aligned (rows_main, 128) prefix."""
    rows_main = p_main.shape[0]
    n_main = rows_main * LANES
    itemsize = jnp.dtype(p_main.dtype).itemsize

    kernel = functools.partial(_bce_sum_kernel, tm=tm)
    cost = pl.CostEstimate(
        flops=6 * n_main,
        transcendentals=2 * n_main,
        bytes_accessed=2 * n_main * itemsize + n_outer * SUBLANES * LANES * 4,
    )

    return pl.pallas_call(
        kernel,
        out_shape=jax.ShapeDtypeStruct((n_outer * SUBLANES, LANES), jnp.float32),
        grid_spec=pltpu.PrefetchScalarGridSpec(
            num_scalar_prefetch=0,
            grid=(n_outer, n_inner),
            in_specs=[
                pl.BlockSpec((tm, LANES), lambda c, i: (c * n_inner + i, 0)),
                pl.BlockSpec((tm, LANES), lambda c, i: (c * n_inner + i, 0)),
            ],
            out_specs=pl.BlockSpec((SUBLANES, LANES), lambda c, i: (c, 0)),
        ),
        compiler_params=pltpu.CompilerParams(
            dimension_semantics=("parallel", "arbitrary"),
        ),
        cost_estimate=cost,
    )(p_main, t_main)


def bce_loss(pred, target):
    """Scalar mean BCE loss over all elements of pred/target (any shape)."""
    assert pred.shape == target.shape
    n = 1
    for d in pred.shape:
        n *= int(d)
    assert n > 0

    p = pred.reshape(-1)
    t = target.reshape(-1)

    rows = n // LANES
    total = jnp.float32(0.0)
    n_main = 0

    if rows >= SUBLANES:
        # Largest tile (multiple of 8 rows, capped at TM_MAX) and the largest
        # prefix made of full tiles; everything else goes to the JAX tail.
        tm = min(TM_MAX, (rows // SUBLANES) * SUBLANES)
        n_blocks = rows // tm
        rows_main = n_blocks * tm
        n_main = rows_main * LANES

        # Split across two TensorCores (v7x) when it divides evenly; harmless
        # sequential loop on single-core chips (v5e/v6e).
        n_outer = 2 if (n_blocks >= 2 and n_blocks % 2 == 0) else 1
        n_inner = n_blocks // n_outer

        p_main = (p if n_main == n else p[:n_main]).reshape(rows_main, LANES)
        t_main = (t if n_main == n else t[:n_main]).reshape(rows_main, LANES)

        partials = _bce_partial_sums(p_main, t_main, tm, n_outer, n_inner)
        total = total + jnp.sum(partials)

    if n_main < n:
        # <1-tile tail: plain JAX (cheaper than padding/copying both inputs).
        p_tail = p[n_main:].astype(jnp.float32)
        t_tail = t[n_main:].astype(jnp.float32)
        lp = jnp.maximum(jnp.log(p_tail), -100.0)
        l1p = jnp.maximum(jnp.log(1.0 - p_tail), -100.0)
        total = total + jnp.sum(-(t_tail * lp + (1.0 - t_tail) * l1p))

    return (total / jnp.float32(n)).astype(jnp.float32)


if __name__ == "__main__":
    key = jax.random.PRNGKey(0)
    k1, k2 = jax.random.split(key)

    # NCHW inputs, like the PyTorch module would receive.
    B, C, H, W = 2, 4, 16, 16
    pred = jax.nn.sigmoid(jax.random.normal(k1, (B, C, H, W), jnp.float32))
    target = jax.random.uniform(k2, (B, C, H, W), jnp.float32)

    bce_loss_jit = jax.jit(bce_loss)
    loss = jax.block_until_ready(bce_loss_jit(pred, target))

    # Reference in plain JAX (same clamping as PyTorch BCELoss).
    lp = jnp.maximum(jnp.log(pred), -100.0)
    l1p = jnp.maximum(jnp.log(1.0 - pred), -100.0)
    ref = jnp.mean(-(target * lp + (1.0 - target) * l1p))
    assert jnp.allclose(loss, ref, rtol=1e-5, atol=1e-6), (loss, ref)

    print("KERNEL_OK")
</pallas_src>

<mosaic_0001>
module attributes {stable_mosaic.version = 11 : i64} {
  func.func @_bce_sum_kernel(%arg0: i32, %arg1: i32, %arg2: memref<16x128xf32, #tpu.memory_space<vmem>>, %arg3: memref<16x128xf32, #tpu.memory_space<vmem>>, %arg4: memref<8x128xf32, #tpu.memory_space<vmem>>) attributes {dimension_semantics = [#tpu.dimension_semantics<parallel>, #tpu.dimension_semantics<arbitrary>], iteration_bounds = array<i64: 1, 1>, scalar_prefetch = 0 : i64, scratch_operands = 0 : i64, tpu.core_type = #tpu.core_type<tc>, window_params = [{transform_indices = @transform_0, window_bounds = array<i64: 16, 128>}, {transform_indices = @transform_1, window_bounds = array<i64: 16, 128>}, {transform_indices = @transform_2, window_bounds = array<i64: 8, 128>}]} {
    %c0 = arith.constant 0 : index
    %c0_0 = arith.constant 0 : index
    %0 = vector.load %arg2[%c0, %c0_0] : memref<16x128xf32, #tpu.memory_space<vmem>>, vector<16x128xf32>
    %c0_1 = arith.constant 0 : index
    %c0_2 = arith.constant 0 : index
    %1 = vector.load %arg3[%c0_1, %c0_2] : memref<16x128xf32, #tpu.memory_space<vmem>>, vector<16x128xf32>
    %2 = math.log %0 : vector<16x128xf32>
    %cst = arith.constant -1.000000e+02 : f32
    %3 = vector.broadcast %cst : f32 to vector<16x128xf32>
    %4 = arith.maximumf %2, %3 : vector<16x128xf32>
    %cst_3 = arith.constant 1.000000e+00 : f32
    %5 = vector.broadcast %cst_3 : f32 to vector<16x128xf32>
    %6 = arith.subf %5, %0 : vector<16x128xf32>
    %7 = math.log %6 : vector<16x128xf32>
    %cst_4 = arith.constant -1.000000e+02 : f32
    %8 = vector.broadcast %cst_4 : f32 to vector<16x128xf32>
    %9 = arith.maximumf %7, %8 : vector<16x128xf32>
    %10 = arith.mulf %1, %4 : vector<16x128xf32>
    %cst_5 = arith.constant 1.000000e+00 : f32
    %11 = vector.broadcast %cst_5 : f32 to vector<16x128xf32>
    %12 = arith.subf %11, %1 : vector<16x128xf32>
    %13 = arith.mulf %12, %9 : vector<16x128xf32>
    %14 = arith.addf %10, %13 : vector<16x128xf32>
    %cst_6 = arith.constant 0.000000e+00 : f32
    %15 = vector.broadcast %cst_6 : f32 to vector<16x128xf32>
    %16 = arith.subf %15, %14 : vector<16x128xf32>
    %17 = vector.shape_cast %16 : vector<16x128xf32> to vector<2x8x128xf32>
    %cst_7 = arith.constant dense<0.000000e+00> : vector<8x128xf32>
    %18 = vector.multi_reduction <add>, %17, %cst_7 [0] : vector<2x8x128xf32> to vector<8x128xf32>
    %c0_i32 = arith.constant 0 : i32
    %19 = arith.cmpi eq, %arg1, %c0_i32 : i32
    %20 = arith.extui %19 : i1 to i32
    %c0_i32_8 = arith.constant 0 : i32
    %21 = arith.cmpi ne, %20, %c0_i32_8 : i32
    scf.if %21 {
      %cst_13 = arith.constant 0.000000e+00 : f32
      %25 = vector.broadcast %cst_13 : f32 to vector<8x128xf32>
      %c0_14 = arith.constant 0 : index
      %c0_15 = arith.constant 0 : index
      %26 = vector.load %arg4[%c0_14, %c0_15] : memref<8x128xf32, #tpu.memory_space<vmem>>, vector<8x128xf32>
      tpu.vector_store %arg4[%c0_14, %c0_15], %25 {strides = array<i32>} : memref<8x128xf32, #tpu.memory_space<vmem>>, vector<8x128xf32>,
    } else {
    }
    %c0_9 = arith.constant 0 : index
    %c0_10 = arith.constant 0 : index
    %22 = vector.load %arg4[%c0_9, %c0_10] : memref<8x128xf32, #tpu.memory_space<vmem>>, vector<8x128xf32>
    %23 = arith.addf %22, %18 : vector<8x128xf32>
    %c0_11 = arith.constant 0 : index
    %c0_12 = arith.constant 0 : index
    %24 = vector.load %arg4[%c0_11, %c0_12] : memref<8x128xf32, #tpu.memory_space<vmem>>, vector<8x128xf32>
    tpu.vector_store %arg4[%c0_11, %c0_12], %23 {strides = array<i32>} : memref<8x128xf32, #tpu.memory_space<vmem>>, vector<8x128xf32>,
    return
  }
  func.func @transform_0(%arg0: i32, %arg1: i32) -> (i32, i32) {
    %c1_i32 = arith.constant 1 : i32
    %0 = arith.muli %arg0, %c1_i32 : i32
    %1 = arith.addi %0, %arg1 : i32
    %c0_i32 = arith.constant 0 : i32
    %c0_i32_0 = arith.constant 0 : i32
    return %1, %c0_i32 : i32, i32
  }
  func.func @transform_1(%arg0: i32, %arg1: i32) -> (i32, i32) {
    %c1_i32 = arith.constant 1 : i32
    %0 = arith.muli %arg0, %c1_i32 : i32
    %1 = arith.addi %0, %arg1 : i32
    %c0_i32 = arith.constant 0 : i32
    %c0_i32_0 = arith.constant 0 : i32
    return %1, %c0_i32 : i32, i32
  }
  func.func @transform_2(%arg0: i32, %arg1: i32) -> (i32, i32) {
    %c0_i32 = arith.constant 0 : i32
    %c0_i32_0 = arith.constant 0 : i32
    return %arg0, %c0_i32 : i32, i32
  }
}

</mosaic_0001>

<bundles_post_ra>
// kernel: bce_loss.1
= control target key start
LH: loop header
LB: loop body
LE: loop exit
PB: predicated region body
PF: predicated region fallthrough
CT: control target
= control target key end

     0   :  { %s147_s0 = inlined_call_operand.vmem [shape: f32[16,128], index: 0, kind: input, shape index: {}]   ;;  %s148_s1 = inlined_call_operand.vmem [shape: f32[16,128], index: 1, kind: input, shape index: {}]   ;;  %s149_s2 = inlined_call_operand.vmem [shape: f32[8,128], index: 2, kind: output, shape index: {}]  }
   0x1   :  { %v55_v0 = vld [vmem:[%s147_s0] sm:$0xff]  ;;  %v56_v1 = vld [vmem:[%s147_s0 + $0x8] sm:$0xff] }
   0x2   :  { %109 = vlog2.f32 %v55_v0  ;;  %v65_v2 = vsub.f32 1.0, %v55_v0  ;;  %v66_v3 = vsub.f32 1.0, %v56_v1  ;;  %v57_v5 = vld [vmem:[%s148_s1] sm:$0xff]  ;;  %v58_v7 = vld [vmem:[%s148_s1 + $0x8] sm:$0xff] }
   0x3   :  { %111 = vlog2.f32 %v56_v1  ;;  %v75_v14 = vsub.f32 1.0, %v57_v5  ;;  %v76_v17 = vsub.f32 1.0, %v58_v7 }
   0x4   :  { %113 = vlog2.f32 %v65_v2 }
   0x5   :  { %115 = vlog2.f32 %v66_v3 }
   0xc   :  { %v110_v4 = vpop.eup %109 }
   0xd   :  { %v112_v6 = vpop.eup %111  ;;  %v60_v8 = vmul.f32 0.6931472, %v110_v4 }
   0xe   :  { %v114_v9 = vpop.eup %113  ;;  %v62_v10 = vmul.f32 0.6931472, %v112_v6 }
   0xf   :  { %v116_v11 = vpop.eup %115  ;;  %v63_v12 = vmax.f32 %v60_v8, -100.0  ;;  %v68_v13 = vmul.f32 0.6931472, %v114_v9 }
  0x10   :  { %v64_v15 = vmax.f32 %v62_v10, -100.0  ;;  %v70_v16 = vmul.f32 0.6931472, %v116_v11 }
  0x11   :  { %v71_v18 = vmax.f32 %v68_v13, -100.0  ;;  %v73_v19 = vmul.f32 %v63_v12, %v57_v5 }
  0x12   :  { %v72_v20 = vmax.f32 %v70_v16, -100.0  ;;  %v74_v21 = vmul.f32 %v64_v15, %v58_v7 }
  0x13   :  { %v77_v22 = vmul.f32 %v75_v14, %v71_v18 }
  0x14   :  { %v78_v23 = vmul.f32 %v76_v17, %v72_v20 }
  0x15   :  { %v79_v24 = vadd.f32 %v77_v22, %v73_v19 }
  0x16   :  { %v80_v25 = vadd.f32 %v78_v23, %v74_v21 }
  0x17   :  { %v81_v26 = vsub.f32 0.0, %v79_v24 }
  0x18   :  { %v82_v27 = vsub.f32 0.0, %v80_v25 }
  0x1a   :  { %v83_v28 = vadd.f32 %v82_v27, %v81_v26 }
  0x1c   :  { %91 = vst [vmem:[%s149_s2] sm:$0xff] %v83_v28 }

</bundles_post_ra>
